<compile_context>
chip_gen: v7x
topology: tpu7x:2x2x1
jax: 0.10.0
libtpu: 0.0.40
codegen_flags: <defaults>
</compile_context>

<pallas_src>
import math

import jax
import jax.numpy as jnp
from jax.experimental import pallas as pl
from jax.experimental.pallas import tpu as pltpu


# ----------------------------------------------------------------------------
# Kernel
# ----------------------------------------------------------------------------
def _gated_mlp_kernel(xk_ref, xr_ref, w_ref, b_ref, o_ref, acc_ref):
    """Grid = (n_tiles_n, n_tiles_m, n_tiles_k); K innermost ("arbitrary")."""
    k = pl.program_id(2)

    @pl.when(k == 0)
    def _():
        acc_ref[...] = jnp.zeros_like(acc_ref)

    # One fused MXU contraction per K step:
    #   (tile_m, tile_k) @ (tile_k, 2*tile_n) -> f32 accumulate.
    # RHS columns [0:tile_n] are the gate weights, [tile_n:2*tile_n] the
    # update weights (packed once, offline, by pack_gated_mlp_params).
    acc_ref[...] += jnp.dot(xk_ref[...], w_ref[...],
                            preferred_element_type=jnp.float32)

    @pl.when(k == pl.num_programs(2) - 1)
    def _():
        tn = o_ref.shape[-1]
        z = acc_ref[...] + b_ref[...].astype(jnp.float32)
        gate = jax.nn.sigmoid(z[:, :tn])     # gate half  (EUP sigmoid)
        value = z[:, tn:]                    # update half
        xr = xr_ref[...].astype(jnp.float32)
        # gate*value + (1-gate)*x  ==  x + gate*(value - x)  (one fewer VPU mul)
        o_ref[...] = (xr + gate * (value - xr)).astype(o_ref.dtype)


# ----------------------------------------------------------------------------
# Tile / VMEM-budget selection
# ----------------------------------------------------------------------------
def _vmem_limit_bytes():
    try:
        cap = int(pltpu.get_tpu_info().vmem_capacity_bytes)
    except Exception:
        cap = 64 * 1024 * 1024  # conservative (v7x-sized) fallback
    # 3/4 of physical VMEM: ~48 MiB on v7x, ~96 MiB on v5e/v6e.  Leaves
    # headroom for compiler scratch, spills and DMA descriptors.
    return (cap * 3) // 4


def _footprint_bytes(tm, tn, tk, dsize):
    lhs = 2 * tm * tk * dsize            # x K-stream, double-buffered
    rhs = 2 * tk * (2 * tn) * dsize      # packed [Wg|Wu], double-buffered
    xr = 2 * tm * tn * dsize             # residual tile
    out = 2 * tm * tn * dsize            # output tile
    bias = 2 * 1 * (2 * tn) * dsize
    acc = tm * (2 * tn) * 4              # f32 accumulator scratch
    return lhs + rhs + xr + out + bias + acc


def _largest_dividing(dim, candidates):
    for c in candidates:
        if dim % c == 0:
            return c
    # Non-128-aligned (or tiny) dim: take it whole as a single block.
    # NOTE: for large, non-128-aligned F, pad F to a multiple of 128 upstream
    # to avoid lane-misaligned gate/value splits and huge single blocks.
    return dim


def pick_tiles(M, F_in, F_out, dsize, vmem_limit=None):
    """Pick (tile_m, tile_n, tile_k) that respect the VMEM budget."""
    if vmem_limit is None:
        vmem_limit = _vmem_limit_bytes()
    budget = int(vmem_limit * 0.8)

    tile_n = _largest_dividing(F_out, (1024, 512, 256, 128))
    tile_k = _largest_dividing(F_in, (512, 256, 128))
    # tile_m: prefer an exact divisor of M (no ragged / wasted MXU rows),
    # otherwise the largest candidate <= M, otherwise all of M.
    tile_m = None
    for c in (1024, 512, 256, 128):
        if c <= M and M % c == 0:
            tile_m = c
            break
    if tile_m is None:
        tile_m = next((c for c in (1024, 512, 256, 128) if c <= M), M)

    def shrinkable(t):
        # Halving a 128-multiple divisor keeps divisibility.
        return t >= 256 and t % 2 == 0

    while _footprint_bytes(tile_m, tile_n, tile_k, dsize) > budget:
        if shrinkable(tile_k):
            tile_k //= 2
        elif shrinkable(tile_n):
            tile_n //= 2
        elif shrinkable(tile_m):
            tile_m //= 2
        else:
            break  # already minimal; the compiler-enforced limit decides
    return tile_m, tile_n, tile_k


# ----------------------------------------------------------------------------
# One-time weight prep (HOISTED out of the per-call hot path)
# ----------------------------------------------------------------------------
def pack_gated_mlp_params(w_gate, b_gate, w_update, b_update, tile_n,
                          compute_dtype=None):
    """Pack [gate | update] so each output tile j sees one contiguous
    (F_in, 2*tile_n) RHS slab: columns [0:tile_n] -> gate_j, [tile_n:2*tile_n]
    -> update_j.  Weights are expected pre-transposed as (in, out).

    `compute_dtype=jnp.bfloat16` casts the packed weights (useful on v5e whose
    MXU is bf16-only); cast x correspondingly at call time.
    """
    F_in, F_out = w_gate.shape
    assert w_update.shape == (F_in, F_out)
    assert F_out % tile_n == 0
    n_tiles_n = F_out // tile_n
    wg = w_gate.reshape(F_in, n_tiles_n, tile_n)
    wu = w_update.reshape(F_in, n_tiles_n, tile_n)
    w_cat = jnp.concatenate([wg, wu], axis=2).reshape(F_in, 2 * F_out)
    bg = b_gate.reshape(n_tiles_n, tile_n)
    bu = b_update.reshape(n_tiles_n, tile_n)
    b_cat = jnp.concatenate([bg, bu], axis=1).reshape(1, 2 * F_out)
    if compute_dtype is not None:
        w_cat = w_cat.astype(compute_dtype)
        b_cat = b_cat.astype(compute_dtype)
    return w_cat, b_cat


# ----------------------------------------------------------------------------
# Hot-path entry point (pre-packed weights)
# ----------------------------------------------------------------------------
def gated_mlp_packed(x, w_cat, b_cat, *, tile_m, tile_n, tile_k,
                     vmem_limit=None):
    """x: (M, F).  w_cat: (F, 2F) packed per tile_n.  b_cat: (1, 2F)."""
    M, F_in = x.shape
    F_out = w_cat.shape[1] // 2
    assert w_cat.shape == (F_in, 2 * F_out)
    assert F_in == F_out, "gated residual requires seq_in == seq_out"
    assert F_out % tile_n == 0, "tile_n must divide the output feature dim"
    assert F_in % tile_k == 0, "tile_k must divide the input feature dim"

    if vmem_limit is None:
        vmem_limit = _vmem_limit_bytes()

    # N outer (parallel), M middle (parallel), K innermost (reduction).
    grid = (F_out // tile_n, pl.cdiv(M, tile_m), F_in // tile_k)

    return pl.pallas_call(
        _gated_mlp_kernel,
        out_shape=jax.ShapeDtypeStruct((M, F_out), x.dtype),
        grid_spec=pltpu.PrefetchScalarGridSpec(
            num_scalar_prefetch=0,
            grid=grid,
            in_specs=[
                # x LHS, streamed along K
                pl.BlockSpec((tile_m, tile_k), lambda j, i, k: (i, k)),
                # x residual tile: k-invariant -> fetched once per output tile
                pl.BlockSpec((tile_m, tile_n), lambda j, i, k: (i, j)),
                # fused [Wg|Wu] tile
                pl.BlockSpec((tile_k, 2 * tile_n), lambda j, i, k: (k, j)),
                # fused [bg|bu] tile
                pl.BlockSpec((1, 2 * tile_n), lambda j, i, k: (0, j)),
            ],
            out_specs=pl.BlockSpec((tile_m, tile_n), lambda j, i, k: (i, j)),
            scratch_shapes=[pltpu.VMEM((tile_m, 2 * tile_n), jnp.float32)],
        ),
        compiler_params=pltpu.CompilerParams(
            dimension_semantics=("parallel", "parallel", "arbitrary"),
            vmem_limit_bytes=int(vmem_limit),
        ),
    )(x, x, w_cat, b_cat)


# ----------------------------------------------------------------------------
# Convenience wrapper (module-like: unpacked weights, arbitrary leading dims)
# ----------------------------------------------------------------------------
def gated_mlp(x, w_gate, b_gate, w_update, b_update, *, tiles=None):
    """x: (..., F).  w_*: (F, F) stored pre-transposed as (in, out).  b_*: (F,).

    NOTE: in a real model, run pack_gated_mlp_params ONCE at parameter-load
    time and call gated_mlp_packed directly in the hot path.
    """
    lead, F_in = x.shape[:-1], x.shape[-1]
    F_out = w_gate.shape[1]
    M = int(math.prod(lead)) if lead else 1
    x2d = x.reshape(M, F_in)

    if tiles is None:
        tiles = pick_tiles(M, F_in, F_out, jnp.dtype(x.dtype).itemsize)
    tile_m, tile_n, tile_k = tiles

    w_cat, b_cat = pack_gated_mlp_params(w_gate, b_gate, w_update, b_update, tile_n)
    y = gated_mlp_packed(x2d, w_cat, b_cat,
                         tile_m=tile_m, tile_n=tile_n, tile_k=tile_k)
    return y.reshape(*lead, F_out)


# ----------------------------------------------------------------------------
# Pure-JAX reference and test harness
# ----------------------------------------------------------------------------
def gated_mlp_ref(x, w_gate, b_gate, w_update, b_update):
    value = x @ w_update + b_update
    gate = jax.nn.sigmoid(x @ w_gate + b_gate)
    return gate * value + (1.0 - gate) * x


def _make_params(key, x_shape, F, dtype=jnp.float32):
    kx, kwg, kbg, kwu, kbu = jax.random.split(key, 5)
    bound = 1.0 / float(F) ** 0.5
    x = jax.random.normal(kx, x_shape, dtype=dtype)
    # Weights stored pre-transposed as (in_features, out_features).
    w_gate = jax.random.uniform(kwg, (F, F), minval=-bound, maxval=bound, dtype=dtype)
    b_gate = jax.random.uniform(kbg, (F,), minval=-bound, maxval=bound, dtype=dtype)
    w_update = jax.random.uniform(kwu, (F, F), minval=-bound, maxval=bound, dtype=dtype)
    b_update = jax.random.uniform(kbu, (F,), minval=-bound, maxval=bound, dtype=dtype)
    return x, w_gate, b_gate, w_update, b_update


if __name__ == "__main__":
    key = jax.random.PRNGKey(0)
    k1, k2 = jax.random.split(key, 2)

    # 1) Small shape consistent with the module: (batch=2, seq=8, features=32), f32.
    x1, wg1, bg1, wu1, bu1 = _make_params(k1, (2, 8, 32), 32)
    y1 = jax.block_until_ready(gated_mlp(x1, wg1, bg1, wu1, bu1))
    r1 = gated_mlp_ref(x1, wg1, bg1, wu1, bu1)
    assert jnp.allclose(y1, r1, atol=1e-4, rtol=1e-4), "mismatch (small f32)"

    # 2) Tiled path with the K reduction axis and hoisted weight packing:
    #    M = F = 384 -> grid (3, 3, 3), 128-aligned tiles, f32 accumulator.
    x2, wg2, bg2, wu2, bu2 = _make_params(k2, (384, 384), 384)
    tm, tn, tk = pick_tiles(384, 384, 384, 4)
    w_cat2, b_cat2 = pack_gated_mlp_params(wg2, bg2, wu2, bu2, tn)  # one-time prep
    y2 = jax.block_until_ready(
        gated_mlp_packed(x2, w_cat2, b_cat2, tile_m=tm, tile_n=tn, tile_k=tk))
    r2 = gated_mlp_ref(x2, wg2, bg2, wu2, bu2)
    assert jnp.allclose(y2, r2, atol=2e-3, rtol=2e-3), "mismatch (tiled f32)"

    # 3) bf16 fast path (native-dtype MXU operands, f32 accumulate + epilogue).
    p3 = tuple(t.astype(jnp.bfloat16) for t in (x1, wg1, bg1, wu1, bu1))
    y3 = jax.block_until_ready(gated_mlp(*p3))
    r3 = gated_mlp_ref(*(t.astype(jnp.float32) for t in p3))
    assert jnp.allclose(y3.astype(jnp.float32), r3, atol=2e-2, rtol=2e-2), "mismatch (bf16)"

    print("KERNEL_OK")
</pallas_src>

<mosaic_0001>
module attributes {stable_mosaic.version = 11 : i64} {
  func.func @_gated_mlp_kernel(%arg0: i32, %arg1: i32, %arg2: i32, %arg3: memref<16x32xf32, #tpu.memory_space<vmem>>, %arg4: memref<16x32xf32, #tpu.memory_space<vmem>>, %arg5: memref<32x64xf32, #tpu.memory_space<vmem>>, %arg6: memref<1x64xf32, #tpu.memory_space<vmem>>, %arg7: memref<16x32xf32, #tpu.memory_space<vmem>>, %arg8: memref<16x64xf32, #tpu.memory_space<vmem>>) attributes {dimension_semantics = [#tpu.dimension_semantics<parallel>, #tpu.dimension_semantics<parallel>, #tpu.dimension_semantics<arbitrary>], iteration_bounds = array<i64: 1, 1, 1>, scalar_prefetch = 0 : i64, scratch_operands = 1 : i64, tpu.core_type = #tpu.core_type<tc>, window_params = [{transform_indices = @transform_0, window_bounds = array<i64: 16, 32>}, {transform_indices = @transform_1, window_bounds = array<i64: 16, 32>}, {transform_indices = @transform_2, window_bounds = array<i64: 32, 64>}, {transform_indices = @transform_3, window_bounds = array<i64: 1, 64>}, {transform_indices = @transform_4, window_bounds = array<i64: 16, 32>}]} {
    %c0_i32 = arith.constant 0 : i32
    %0 = arith.cmpi eq, %arg2, %c0_i32 : i32
    %1 = arith.extui %0 : i1 to i32
    %c0_i32_0 = arith.constant 0 : i32
    %2 = arith.cmpi ne, %1, %c0_i32_0 : i32
    scf.if %2 {
      %cst_10 = arith.constant 0.000000e+00 : f32
      %12 = vector.broadcast %cst_10 : f32 to vector<16x64xf32>
      %c0_11 = arith.constant 0 : index
      %c0_12 = arith.constant 0 : index
      %13 = vector.load %arg8[%c0_11, %c0_12] : memref<16x64xf32, #tpu.memory_space<vmem>>, vector<16x64xf32>
      tpu.vector_store %arg8[%c0_11, %c0_12], %12 {strides = array<i32>} : memref<16x64xf32, #tpu.memory_space<vmem>>, vector<16x64xf32>,
    } else {
    }
    %c0 = arith.constant 0 : index
    %c0_1 = arith.constant 0 : index
    %3 = vector.load %arg8[%c0, %c0_1] : memref<16x64xf32, #tpu.memory_space<vmem>>, vector<16x64xf32>
    %c0_2 = arith.constant 0 : index
    %c0_3 = arith.constant 0 : index
    %4 = vector.load %arg3[%c0_2, %c0_3] : memref<16x32xf32, #tpu.memory_space<vmem>>, vector<16x32xf32>
    %c0_4 = arith.constant 0 : index
    %c0_5 = arith.constant 0 : index
    %5 = vector.load %arg5[%c0_4, %c0_5] : memref<32x64xf32, #tpu.memory_space<vmem>>, vector<32x64xf32>
    %cst = arith.constant dense<0.000000e+00> : vector<16x64xf32>
    %6 = tpu.matmul %4, %5, %cst {dimension_numbers = #tpu.dot_dimension_numbers<[1], [0], [0], [1], [0, 0, 1, 1], [], []>} : vector<16x32xf32>, vector<32x64xf32>, vector<16x64xf32> -> vector<16x64xf32>
    %7 = arith.addf %3, %6 : vector<16x64xf32>
    %c0_6 = arith.constant 0 : index
    %c0_7 = arith.constant 0 : index
    %8 = vector.load %arg8[%c0_6, %c0_7] : memref<16x64xf32, #tpu.memory_space<vmem>>, vector<16x64xf32>
    tpu.vector_store %arg8[%c0_6, %c0_7], %7 {strides = array<i32>} : memref<16x64xf32, #tpu.memory_space<vmem>>, vector<16x64xf32>,
    %c0_i32_8 = arith.constant 0 : i32
    %9 = arith.cmpi eq, %arg2, %c0_i32_8 : i32
    %10 = arith.extui %9 : i1 to i32
    %c0_i32_9 = arith.constant 0 : i32
    %11 = arith.cmpi ne, %10, %c0_i32_9 : i32
    scf.if %11 {
      %c0_10 = arith.constant 0 : index
      %c0_11 = arith.constant 0 : index
      %12 = vector.load %arg8[%c0_10, %c0_11] : memref<16x64xf32, #tpu.memory_space<vmem>>, vector<16x64xf32>
      %c0_12 = arith.constant 0 : index
      %c0_13 = arith.constant 0 : index
      %13 = vector.load %arg6[%c0_12, %c0_13] : memref<1x64xf32, #tpu.memory_space<vmem>>, vector<1x64xf32>
      %14 = vector.broadcast %13 : vector<1x64xf32> to vector<16x64xf32>
      %15 = arith.addf %12, %14 : vector<16x64xf32>
      %16 = vector.extract_strided_slice %15 {offsets = [0, 0], sizes = [16, 32], strides = [1, 1]} : vector<16x64xf32> to vector<16x32xf32>
      %17 = arith.negf %16 : vector<16x32xf32>
      %18 = math.exp %17 : vector<16x32xf32>
      %cst_14 = arith.constant 1.000000e+00 : f32
      %19 = vector.broadcast %cst_14 : f32 to vector<16x32xf32>
      %20 = arith.addf %19, %18 : vector<16x32xf32>
      %21 = arith.divf %19, %20 : vector<16x32xf32>
      %22 = vector.extract_strided_slice %15 {offsets = [0, 32], sizes = [16, 32], strides = [1, 1]} : vector<16x64xf32> to vector<16x32xf32>
      %c0_15 = arith.constant 0 : index
      %c0_16 = arith.constant 0 : index
      %23 = vector.load %arg4[%c0_15, %c0_16] : memref<16x32xf32, #tpu.memory_space<vmem>>, vector<16x32xf32>
      %24 = arith.subf %22, %23 : vector<16x32xf32>
      %25 = arith.mulf %21, %24 : vector<16x32xf32>
      %26 = arith.addf %23, %25 : vector<16x32xf32>
      %c0_17 = arith.constant 0 : index
      %c0_18 = arith.constant 0 : index
      %27 = vector.load %arg7[%c0_17, %c0_18] : memref<16x32xf32, #tpu.memory_space<vmem>>, vector<16x32xf32>
      tpu.vector_store %arg7[%c0_17, %c0_18], %26 {strides = array<i32>} : memref<16x32xf32, #tpu.memory_space<vmem>>, vector<16x32xf32>,
    } else {
    }
    return
  }
  func.func @transform_0(%arg0: i32, %arg1: i32, %arg2: i32) -> (i32, i32) {
    %c0_i32 = arith.constant 0 : i32
    return %arg1, %arg2 : i32, i32
  }
  func.func @transform_1(%arg0: i32, %arg1: i32, %arg2: i32) -> (i32, i32) {
    %c0_i32 = arith.constant 0 : i32
    return %arg1, %arg0 : i32, i32
  }
  func.func @transform_2(%arg0: i32, %arg1: i32, %arg2: i32) -> (i32, i32) {
    %c0_i32 = arith.constant 0 : i32
    return %arg2, %arg0 : i32, i32
  }
  func.func @transform_3(%arg0: i32, %arg1: i32, %arg2: i32) -> (i32, i32) {
    %c0_i32 = arith.constant 0 : i32
    %c0_i32_0 = arith.constant 0 : i32
    return %c0_i32, %arg0 : i32, i32
  }
  func.func @transform_4(%arg0: i32, %arg1: i32, %arg2: i32) -> (i32, i32) {
    %c0_i32 = arith.constant 0 : i32
    return %arg1, %arg0 : i32, i32
  }
}

</mosaic_0001>

<bundles_post_ra>
// kernel: tpu_custom_call.1
= control target key start
LH: loop header
LB: loop body
LE: loop exit
PB: predicated region body
PF: predicated region fallthrough
CT: control target
= control target key end

     0   :  { %9 = vsyncpa [#allocation4], 0  ;;  %s484_s0 = inlined_call_operand.hbm [shape: f32[16,32], index: 0, kind: input, shape index: {}]   ;;  %s485_s1 = inlined_call_operand.hbm [shape: f32[16,32], index: 1, kind: input, shape index: {}]   ;;  %s486_s2 = inlined_call_operand.hbm [shape: f32[32,64], index: 2, kind: input, shape index: {}]   ;;  %s487_s3 = inlined_call_operand.vmem [shape: f32[1,64], index: 3, kind: input, shape index: {}]   ;;  %s488_s4 = inlined_call_operand.hbm [shape: f32[16,32], index: 4, kind: output, shape index: {}]  }
   0x1   :  { %10 = vsyncpa [#allocation7], 0 }
   0x2   :  { %11 = vsyncpa [#allocation5], 0  ;;  %s372_s15 = smov [#allocation6]   ;;  %s373_s17 = smov [#allocation3]  }
   0x3   :  { %s29_s16 = sshll.u32 %s372_s15, 4  ;;  %s17_s18 = sshll.u32 %s373_s17, 4  ;;  %s30_s16 = int_to_ptr.vmem [resolvable:$true] %s29_s16  ;;  %s406_s18 = int_to_ptr.vmem [resolvable:$true] %s17_s18 }
   0x4   :  { %s278_s21 = scalar_lea.hbm %s485_s1, 256 }
   0x5   :  { %p279_p0 = scmp.ne.s32.totalorder %s485_s1, %s278_s21  ;;  %p282_p1 = scmp.lt.u32.totalorder %s278_s21, %s485_s1 }
   0x7   :  { %p284_p2 = pnand %p282_p1, %p279_p0 }
   0x9   :  { %287 = shalt.err (!%p284_p2)
}
   0xa   :  { %s288_s26 = scalar_lea.vmem %s30_s16, 256  ;;  %p293_p4 = scmp.lt.s32.totalorder %s30_s16, %s30_s16 }
   0xb   :  { %p289_p3 = scmp.ne.s32.totalorder %s30_s16, %s288_s26  ;;  %p294_p5 = scmp.lt.s32.totalorder %s288_s26, %s288_s26 }
   0xd   :  { %p295_p6 = por %p294_p5, %p293_p4 }
   0xf   :  { %p296_p7 = pnand %p295_p6, %p289_p3 }
  0x11   :  { %299 = shalt.err (!%p296_p7)
}
  0x12   :  { %s374_s27 = smov 128   ;;  %s375_s28 = smov 8  }
  0x13   :  { %35 = dma.hbm_to_vmem [thread:$0]  %s485_s1, 256, %s30_s16, [#allocation7], %s374_s27, %s374_s27, %s375_s28  }
  0x14   :  { %s300_s7 = scalar_lea.hbm %s484_s0, 256 }
  0x15   :  { %p301_p8 = scmp.ne.s32.totalorder %s484_s0, %s300_s7  ;;  %p304_p9 = scmp.lt.u32.totalorder %s300_s7, %s484_s0 }
  0x17   :  { %p306_p10 = pnand %p304_p9, %p301_p8 }
  0x19   :  { %309 = shalt.err (!%p306_p10)
}
  0x1a   :  { %s310_s12 = scalar_lea.vmem %s406_s18, 256  ;;  %p315_p12 = scmp.lt.s32.totalorder %s406_s18, %s406_s18 }
  0x1b   :  { %p311_p11 = scmp.ne.s32.totalorder %s406_s18, %s310_s12  ;;  %p316_p13 = scmp.lt.s32.totalorder %s310_s12, %s310_s12 }
  0x1d   :  { %p317_p0 = por %p316_p13, %p315_p12 }
  0x1f   :  { %p318_p1 = pnand %p317_p0, %p311_p11 }
  0x21   :  { %321 = shalt.err (!%p318_p1)
}
  0x22   :  { %23 = dma.hbm_to_vmem [thread:$0]  %s484_s0, 256, %s406_s18, [#allocation4], %s374_s27, %s374_s27, %s375_s28  }
  0x23   :  { %s376_s14 = smov [#allocation8]   ;;  %s322_s19 = scalar_lea.hbm %s486_s2, 512 }
  0x24   :  { %s41_s15 = sshll.u32 %s376_s14, 4  ;;  %p323_p2 = scmp.ne.s32.totalorder %s486_s2, %s322_s19  ;;  %s42_s15 = int_to_ptr.vmem [resolvable:$true] %s41_s15 }
  0x25   :  { %p326_p3 = scmp.lt.u32.totalorder %s322_s19, %s486_s2 }
  0x27   :  { %p328_p4 = pnand %p326_p3, %p323_p2 }
  0x29   :  { %331 = shalt.err (!%p328_p4)
}
  0x2a   :  { %s332_s24 = scalar_lea.vmem %s42_s15, 512  ;;  %p337_p6 = scmp.lt.s32.totalorder %s42_s15, %s42_s15 }
  0x2b   :  { %p333_p5 = scmp.ne.s32.totalorder %s42_s15, %s332_s24  ;;  %p338_p7 = scmp.lt.s32.totalorder %s332_s24, %s332_s24 }
  0x2d   :  { %p339_p8 = por %p338_p7, %p337_p6 }
  0x2f   :  { %p340_p9 = pnand %p339_p8, %p333_p5 }
  0x31   :  { %343 = shalt.err (!%p340_p9)
}
  0x32   :  { %47 = dma.hbm_to_vmem [thread:$0]  %s486_s2, 512, %s42_s15, [#allocation7], %s374_s27, %s374_s27, %s375_s28  }
  0x33   :  { %366 = dma.done.wait [#allocation4], 256  }
  0x34   :  { %367 = vsyncadd [#allocation4], 4294967040 }
  0x35   :  { %368 = dma.done.wait [#allocation7], 768  }
  0x36   :  { %369 = vsyncadd [#allocation7], 4294966528  ;;  %vm63_vm0 = vcmask 523264   ;;  %v377_v0 = vmov 0.0   ;;  %vm74_vm1 = vcmask 261120   ;;  %v70_v1 = vld [vmem:[#allocation8] sm:$0xff] }
  0x37   :  { %65 = vst.msk [vmem:[#allocation2 + $0x8] sm:$0xff] %vm63_vm0, %v377_v0  ;;  %64 = vst.msk [vmem:[#allocation2] sm:$0xff] %vm63_vm0, %v377_v0  ;;  %v71_v2 = vld [vmem:[#allocation8 + $0x8] sm:$0xff]  ;;  %v72_v3 = vld [vmem:[#allocation8 + $0x10] sm:$0xff]  ;;  %s378_s2 = smov 32   ;;  %s379_s29 = smov 96  }
  0x38   :  { %v253_v4 = vpack.c.bf16 %v71_v2, %v70_v1  ;;  %v73_v5 = vld [vmem:[#allocation8 + $0x18] sm:$0xff]  ;;  %v68_v6 = vld [vmem:[#allocation3] sm:$0xff]  ;;  %v187_v8 = vld [vmem:[#allocation6] sm:$0xff] }
  0x39   :  { %v257_v7 = vpack.c.bf16 %v73_v5, %v72_v3  ;;  %250 = vmatprep.mubr.msk.f32.mxu0 %vm74_vm1, %v68_v6  ;;  %191 = vrot.lane.b32.xlu0 %v187_v8, %s378_s2  ;;  %v188_v9 = vld [vmem:[#allocation6 + $0x8] sm:$0xff]  ;;  %v69_v10 = vld [vmem:[#allocation3 + $0x8] sm:$0xff]  ;;  %v233_v18 = vld [vmem:[%s487_s3] ss:$0 sm:$0xff]  ;;  %s380_s3 = smov [#allocation9]  }
  0x3a   :  { %254 = vmatprep.subr.bf16.mxu0 %v253_v4  ;;  %s218_s30 = sshll.u32 %s380_s3, 4  ;;  %s219_s30 = int_to_ptr.vmem [resolvable:$true] %s218_s30 }
  0x3b   :  { %256 = vmatpush3.bf16.msra.mxu0 %v253_v4  ;;  %s344_s5 = scalar_lea.vmem %s219_s30, 256  ;;  %p349_p11 = scmp.lt.s32.totalorder %s219_s30, %s219_s30 }
  0x3c   :  { %258 = vmatprep.subr.bf16.mxu0 %v257_v7  ;;  %p345_p10 = scmp.ne.s32.totalorder %s219_s30, %s344_s5  ;;  %p350_p12 = scmp.lt.s32.totalorder %s344_s5, %s344_s5 }
  0x3d   :  { %193 = vrot.lane.b32.xlu0 %v188_v9, %s378_s2 }
  0x3e   :  { %v67_v11 = vld [vmem:[#allocation2 + $0x8] sm:$0xff]  ;;  %v66_v12 = vld [vmem:[#allocation2] sm:$0xff]  ;;  %p351_p13 = por %p350_p12, %p349_p11 }
  0x3f   :  { %260 = vmatpush3.bf16.msra.mxu0 %v257_v7 }
  0x40   :  { %p352_p0 = pnand %p351_p13, %p345_p10 }
  0x42   :  { %251 = vmatmul.mubr.msk.f32.vlgmr.msra.gmra.mrb[0].mxu0 %vm74_vm1, %v69_v10 }
  0xab   :  { %v192_v17 = vpop.permute.xlu0 %191 }
  0xaf   :  { %v194_v24 = vpop.permute.xlu0 %193 }
 0x115   :  { %v252_v13 = vpop.f32.mrb[0].mxu0 }
 0x116   :  { %v157_v14 = vadd.f32 %v252_v13, %v67_v11  ;;  %v147_v15 = vpop.f32.mrb[1].mxu0 }
 0x117   :  { %v156_v16 = vadd.f32 %v147_v15, %v66_v12 }
 0x118   :  { %160 = vst.msk [vmem:[#allocation2 + $0x8] sm:$0xff] %vm63_vm0, %v157_v14 }
 0x119   :  { %159 = vst.msk [vmem:[#allocation2] sm:$0xff] %vm63_vm0, %v156_v16 }
 0x11f   :  { %v165_v20 = vld [vmem:[#allocation2 + $0x8] sm:$0xff] }
 0x120   :  { %v164_v19 = vld [vmem:[#allocation2] sm:$0xff]  ;;  %v174_v23 = vadd.f32 %v233_v18, %v165_v20 }
 0x121   :  { %v173_v21 = vadd.f32 %v233_v18, %v164_v19 }
 0x122   :  { %v198_v25 = vsub.f32 %v174_v23, %v194_v24  ;;  %v235_v27 = vmul.f32 -1.442695, %v174_v23 }
 0x123   :  { %v197_v22 = vsub.f32 %v173_v21, %v192_v17  ;;  %v234_v26 = vmul.f32 -1.442695, %v173_v21 }
 0x125   :  { %201 = vrot.lane.b32.xlu1 %v197_v22, %s379_s29  ;;  %270 = vpow2.f32 %v234_v26 }
 0x126   :  { %272 = vpow2.f32 %v235_v27 }
 0x129   :  { %203 = vrot.lane.b32.xlu1 %v198_v25, %s379_s29 }
 0x12f   :  { %v271_v28 = vpop.eup %270 }
 0x130   :  { %v181_v29 = vadd.f32 1.0, %v271_v28  ;;  %v273_v30 = vpop.eup %272 }
 0x131   :  { %v182_v31 = vadd.f32 1.0, %v273_v30 }
 0x132   :  { %274 = vrcp.f32 %v181_v29 }
 0x133   :  { %276 = vrcp.f32 %v182_v31 }
 0x13c   :  { %v275_v32 = vpop.eup %274 }
 0x13d   :  { %v277_v36 = vpop.eup %276 }
 0x197   :  { %v202_v33 = vpop.permute.xlu1 %201 }
 0x198   :  { %v207_v34 = vmul.f32 %v275_v32, %v202_v33 }
 0x19a   :  { %v209_v35 = vadd.f32 %v207_v34, %v187_v8 }
 0x19b   :  { %v204_v37 = vpop.permute.xlu1 %203 }
 0x19c   :  { %211 = vst.msk [vmem:[#allocation9] sm:$0xff] %vm74_vm1, %v209_v35  ;;  %v208_v38 = vmul.f32 %v277_v36, %v204_v37 }
 0x19e   :  { %v210_v39 = vadd.f32 %v208_v38, %v188_v9 }
 0x1a0   :  { %212 = vst.msk [vmem:[#allocation9 + $0x8] sm:$0xff] %vm74_vm1, %v210_v39 }
 0x1a1   :  { %355 = shalt.err (!%p352_p0)
}
 0x1a2   :  { %s356_s8 = scalar_lea.hbm %s488_s4, 256 }
 0x1a3   :  { %p357_p1 = scmp.ne.s32.totalorder %s488_s4, %s356_s8  ;;  %p360_p2 = scmp.lt.u32.totalorder %s356_s8, %s488_s4 }
 0x1a5   :  { %p362_p3 = pnand %p360_p2, %p357_p1 }
 0x1a7   :  { %365 = shalt.err (!%p362_p3)
}
 0x1a8   :  { %224 = dma.vmem_to_hbm [thread:$0]  %s219_s30, 256, %s488_s4, [#allocation5], %s374_s27, %s374_s27, %s375_s28  }
 0x1a9   :  { %370 = dma.done.wait [#allocation5], 256  }
 0x1aa   :  { %371 = vsyncadd [#allocation5], 4294967040 }
 0x1ab   :  { %228 = vsyncpa [#allocation4], 1 }
 0x1ac   :  { %229 = vsyncpa [#allocation7], 1 }
 0x1ad   :  { %230 = vsyncpa [#allocation5], 1 }

</bundles_post_ra>
